<compile_context>
chip_gen: v7x
topology: tpu7x:2x2x1
jax: 0.10.0
libtpu: 0.0.40
codegen_flags: <defaults>
</compile_context>

<pallas_src>
import functools

import jax
import jax.numpy as jnp
from jax.experimental import pallas as pl
from jax.experimental.pallas import tpu as pltpu


def _round_up(a, b):
    return (a + b - 1) // b * b


def _snn_linear_kernel(x_ref, w_ref, b_ref, spk_ref, mem_ref,
                       mem_scratch, spk_scratch, *opt_scratch,
                       beta, threshold, t_blk, rate_encoding):
    cur_scratch = opt_scratch[0] if opt_scratch else None
    tb = pl.program_id(1)  # time-block index (axis 1; axis 0 is the output tile)

    @pl.when(tb == 0)
    def _():
        mem_scratch[...] = jnp.zeros_like(mem_scratch)
        spk_scratch[...] = jnp.zeros_like(spk_scratch)
        if not rate_encoding:
            # Loop-invariant current: compute once per output tile, keep resident.
            cur_scratch[...] = (
                jnp.dot(x_ref[...], w_ref[...],
                        preferred_element_type=jnp.float32) + b_ref[...])

    if rate_encoding:
        # One lane-dense MXU matmul for the whole time block:
        #   (T_BLK * B_pad, K_pad) @ (K_pad, N_blk)
        _, b_pad, k_pad = x_ref.shape
        n_blk = w_ref.shape[1]
        x2 = x_ref[...].reshape(t_blk * b_pad, k_pad)
        cur_blk = (jnp.dot(x2, w_ref[...], preferred_element_type=jnp.float32)
                   + b_ref[...]).reshape(t_blk, b_pad, n_blk)
        cur_static = None
    else:
        cur_blk = None
        cur_static = cur_scratch[...]   # loaded once per time block

    # LIF recurrence carried in registers across the unrolled block:
    # one VMEM load/store of the state per time block (not per step).
    mem = mem_scratch[...]
    reset = spk_scratch[...]            # == heaviside(mem - threshold)
    for i in range(t_blk):
        cur_i = cur_blk[i] if rate_encoding else cur_static
        mem = beta * mem + cur_i - reset * threshold
        reset = (mem > threshold).astype(jnp.float32)
        spk_ref[i] = reset.astype(spk_ref.dtype)
        mem_ref[i] = mem.astype(mem_ref.dtype)
    mem_scratch[...] = mem
    spk_scratch[...] = reset


def snn_linear_forward(x, weight, bias, *, beta, steps, threshold=1.0,
                       rate_encoding=False, t_blk=None, n_blk=None,
                       compute_dtype=None):
    """Returns (spk_rec, mem_rec), each [steps, batch, output_dims], float32."""
    if rate_encoding:
        assert x.ndim == 3 and x.shape[0] == steps
        batch, input_dims = x.shape[1], x.shape[2]
    else:
        assert x.ndim == 2
        batch, input_dims = x.shape
    output_dims = weight.shape[1]

    if t_blk is None:
        t_blk = min(steps, 16)
    steps_pad = _round_up(steps, t_blk)
    b_pad = _round_up(batch, 8)
    k_pad = _round_up(input_dims, 128)
    n_pad = _round_up(output_dims, 128)
    if n_blk is None:
        n_blk = min(n_pad, 512)          # tune down for huge layers / megacore
    n_blk = _round_up(min(n_blk, n_pad), 128)
    n_pad = _round_up(n_pad, n_blk)
    n_tiles = n_pad // n_blk

    f32 = jnp.float32
    w_p = jnp.zeros((k_pad, n_pad), f32).at[:input_dims, :output_dims].set(
        weight.astype(f32))
    b_p = jnp.zeros((1, n_pad), f32).at[0, :output_dims].set(bias.astype(f32))

    if rate_encoding:
        x_p = jnp.zeros((steps_pad, b_pad, k_pad), f32)
        x_p = x_p.at[:steps, :batch, :input_dims].set(x.astype(f32))
        x_spec = pl.BlockSpec((t_blk, b_pad, k_pad), lambda n, tb: (tb, 0, 0))
    else:
        x_p = jnp.zeros((b_pad, k_pad), f32).at[:batch, :input_dims].set(
            x.astype(f32))
        x_spec = pl.BlockSpec((b_pad, k_pad), lambda n, tb: (0, 0))

    if compute_dtype is not None:  # e.g. jnp.bfloat16 on v6e/v7x
        x_p = x_p.astype(compute_dtype)
        w_p = w_p.astype(compute_dtype)

    kernel = functools.partial(
        _snn_linear_kernel,
        beta=float(beta), threshold=float(threshold),
        t_blk=t_blk, rate_encoding=rate_encoding)

    out_shapes = (
        jax.ShapeDtypeStruct((steps_pad, b_pad, n_pad), f32),
        jax.ShapeDtypeStruct((steps_pad, b_pad, n_pad), f32),
    )

    scratch_shapes = [
        pltpu.VMEM((b_pad, n_blk), f32),  # membrane state (per output tile)
        pltpu.VMEM((b_pad, n_blk), f32),  # previous spike (reset term)
    ]
    if not rate_encoding:
        scratch_shapes.append(pltpu.VMEM((b_pad, n_blk), f32))  # hoisted current

    grid_spec = pltpu.PrefetchScalarGridSpec(
        num_scalar_prefetch=0,
        grid=(n_tiles, steps_pad // t_blk),
        in_specs=[
            x_spec,
            pl.BlockSpec((k_pad, n_blk), lambda n, tb: (0, n)),
            pl.BlockSpec((1, n_blk), lambda n, tb: (0, n)),
        ],
        out_specs=[
            pl.BlockSpec((t_blk, b_pad, n_blk), lambda n, tb: (tb, 0, n)),
            pl.BlockSpec((t_blk, b_pad, n_blk), lambda n, tb: (tb, 0, n)),
        ],
        scratch_shapes=scratch_shapes,
    )

    spk_rec, mem_rec = pl.pallas_call(
        kernel,
        out_shape=out_shapes,
        grid_spec=grid_spec,
        compiler_params=pltpu.CompilerParams(
            # Output tiles are independent; the steps axis is a sequential recurrence.
            dimension_semantics=("parallel", "arbitrary"),
            vmem_limit_bytes=64 * 1024 * 1024,
        ),
    )(x_p, w_p, b_p)

    return (spk_rec[:steps, :batch, :output_dims],
            mem_rec[:steps, :batch, :output_dims])


def _reference(x, weight, bias, *, beta, steps, threshold=1.0,
               rate_encoding=False):
    # Plain-JAX reference mirroring snntorch Leaky (subtract reset, strict >).
    batch = x.shape[-2]
    output_dims = weight.shape[1]
    mem = jnp.zeros((batch, output_dims), jnp.float32)
    spks, mems = [], []
    for t in range(steps):
        xt = x[t] if rate_encoding else x
        cur = xt @ weight + bias
        reset = (mem > threshold).astype(jnp.float32)
        mem = beta * mem + cur - reset * threshold
        spk = (mem > threshold).astype(jnp.float32)
        spks.append(spk)
        mems.append(mem)
    return jnp.stack(spks), jnp.stack(mems)


if __name__ == "__main__":
    batch, input_dims, output_dims, steps = 2, 32, 16, 8
    beta = 0.9

    key = jax.random.PRNGKey(0)
    kx, kw, kb, kr = jax.random.split(key, 4)

    # Deterministic init, matching nn.Linear's U(-1/sqrt(in), 1/sqrt(in)).
    bound = 1.0 / (input_dims ** 0.5)
    weight = jax.random.uniform(kw, (input_dims, output_dims), jnp.float32,
                                minval=-bound, maxval=bound)
    bias = jax.random.uniform(kb, (output_dims,), jnp.float32,
                              minval=-bound, maxval=bound)
    x = jax.random.normal(kx, (batch, input_dims), jnp.float32)

    # --- rate_encoding=False (static input reused every step) ---
    # t_blk=4 exercises the membrane-state carry across grid iterations.
    spk_rec, mem_rec = snn_linear_forward(x, weight, bias, beta=beta,
                                          steps=steps, rate_encoding=False,
                                          t_blk=4)
    jax.block_until_ready((spk_rec, mem_rec))
    spk_ref, mem_ref = _reference(x, weight, bias, beta=beta, steps=steps)
    assert spk_rec.shape == (steps, batch, output_dims)
    assert mem_rec.shape == (steps, batch, output_dims)
    assert jnp.allclose(spk_rec, spk_ref, atol=1e-4)
    assert jnp.allclose(mem_rec, mem_ref, atol=1e-4)

    # --- rate_encoding=True (per-step spike-encoded input) ---
    x_rate = (jax.random.uniform(kr, (steps, batch, input_dims)) < 0.5
              ).astype(jnp.float32)
    spk_rec_r, mem_rec_r = snn_linear_forward(x_rate, weight, bias, beta=beta,
                                              steps=steps, rate_encoding=True,
                                              t_blk=4)
    jax.block_until_ready((spk_rec_r, mem_rec_r))
    spk_ref_r, mem_ref_r = _reference(x_rate, weight, bias, beta=beta,
                                      steps=steps, rate_encoding=True)
    assert spk_rec_r.shape == (steps, batch, output_dims)
    assert mem_rec_r.shape == (steps, batch, output_dims)
    assert jnp.allclose(spk_rec_r, spk_ref_r, atol=1e-4)
    assert jnp.allclose(mem_rec_r, mem_ref_r, atol=1e-4)

    print("KERNEL_OK")
</pallas_src>

<mosaic_0001>
module attributes {stable_mosaic.version = 11 : i64} {
  func.func @_snn_linear_kernel(%arg0: i32, %arg1: i32, %arg2: memref<8x128xf32, #tpu.memory_space<vmem>>, %arg3: memref<128x128xf32, #tpu.memory_space<vmem>>, %arg4: memref<1x128xf32, #tpu.memory_space<vmem>>, %arg5: memref<4x8x128xf32, #tpu.memory_space<vmem>>, %arg6: memref<4x8x128xf32, #tpu.memory_space<vmem>>, %arg7: memref<8x128xf32, #tpu.memory_space<vmem>>, %arg8: memref<8x128xf32, #tpu.memory_space<vmem>>, %arg9: memref<8x128xf32, #tpu.memory_space<vmem>>) attributes {dimension_semantics = [#tpu.dimension_semantics<parallel>, #tpu.dimension_semantics<arbitrary>], iteration_bounds = array<i64: 1, 2>, scalar_prefetch = 0 : i64, scratch_operands = 3 : i64, tpu.core_type = #tpu.core_type<tc>, window_params = [{pipeline_mode = #tpu.pipeline_mode<synchronous>, transform_indices = @transform_0, window_bounds = array<i64: 8, 128>}, {transform_indices = @transform_1, window_bounds = array<i64: 128, 128>}, {transform_indices = @transform_2, window_bounds = array<i64: 1, 128>}, {transform_indices = @transform_3, window_bounds = array<i64: 4, 8, 128>}, {transform_indices = @transform_4, window_bounds = array<i64: 4, 8, 128>}]} {
    %c0_i32 = arith.constant 0 : i32
    %0 = arith.cmpi eq, %arg1, %c0_i32 : i32
    %1 = arith.extui %0 : i1 to i32
    %c0_i32_0 = arith.constant 0 : i32
    %2 = arith.cmpi ne, %1, %c0_i32_0 : i32
    scf.if %2 {
      %cst_42 = arith.constant 0.000000e+00 : f32
      %72 = vector.broadcast %cst_42 : f32 to vector<8x128xf32>
      %c0_43 = arith.constant 0 : index
      %c0_44 = arith.constant 0 : index
      %73 = vector.load %arg7[%c0_43, %c0_44] : memref<8x128xf32, #tpu.memory_space<vmem>>, vector<8x128xf32>
      tpu.vector_store %arg7[%c0_43, %c0_44], %72 {strides = array<i32>} : memref<8x128xf32, #tpu.memory_space<vmem>>, vector<8x128xf32>,
      %cst_45 = arith.constant 0.000000e+00 : f32
      %74 = vector.broadcast %cst_45 : f32 to vector<8x128xf32>
      %c0_46 = arith.constant 0 : index
      %c0_47 = arith.constant 0 : index
      %75 = vector.load %arg8[%c0_46, %c0_47] : memref<8x128xf32, #tpu.memory_space<vmem>>, vector<8x128xf32>
      tpu.vector_store %arg8[%c0_46, %c0_47], %74 {strides = array<i32>} : memref<8x128xf32, #tpu.memory_space<vmem>>, vector<8x128xf32>,
      %c0_48 = arith.constant 0 : index
      %c0_49 = arith.constant 0 : index
      %76 = vector.load %arg2[%c0_48, %c0_49] : memref<8x128xf32, #tpu.memory_space<vmem>>, vector<8x128xf32>
      %c0_50 = arith.constant 0 : index
      %c0_51 = arith.constant 0 : index
      %77 = vector.load %arg3[%c0_50, %c0_51] : memref<128x128xf32, #tpu.memory_space<vmem>>, vector<128x128xf32>
      %cst_52 = arith.constant dense<0.000000e+00> : vector<8x128xf32>
      %78 = tpu.matmul %76, %77, %cst_52 {dimension_numbers = #tpu.dot_dimension_numbers<[1], [0], [0], [1], [0, 0, 1, 1], [], []>} : vector<8x128xf32>, vector<128x128xf32>, vector<8x128xf32> -> vector<8x128xf32>
      %c0_53 = arith.constant 0 : index
      %c0_54 = arith.constant 0 : index
      %79 = vector.load %arg4[%c0_53, %c0_54] : memref<1x128xf32, #tpu.memory_space<vmem>>, vector<1x128xf32>
      %80 = vector.broadcast %79 : vector<1x128xf32> to vector<8x128xf32>
      %81 = arith.addf %78, %80 : vector<8x128xf32>
      %c0_55 = arith.constant 0 : index
      %c0_56 = arith.constant 0 : index
      %82 = vector.load %arg9[%c0_55, %c0_56] : memref<8x128xf32, #tpu.memory_space<vmem>>, vector<8x128xf32>
      tpu.vector_store %arg9[%c0_55, %c0_56], %81 {strides = array<i32>} : memref<8x128xf32, #tpu.memory_space<vmem>>, vector<8x128xf32>,
    } else {
    }
    %c0 = arith.constant 0 : index
    %c0_1 = arith.constant 0 : index
    %3 = vector.load %arg9[%c0, %c0_1] : memref<8x128xf32, #tpu.memory_space<vmem>>, vector<8x128xf32>
    %c0_2 = arith.constant 0 : index
    %c0_3 = arith.constant 0 : index
    %4 = vector.load %arg7[%c0_2, %c0_3] : memref<8x128xf32, #tpu.memory_space<vmem>>, vector<8x128xf32>
    %c0_4 = arith.constant 0 : index
    %c0_5 = arith.constant 0 : index
    %5 = vector.load %arg8[%c0_4, %c0_5] : memref<8x128xf32, #tpu.memory_space<vmem>>, vector<8x128xf32>
    %cst = arith.constant 0.899999976 : f32
    %6 = vector.broadcast %cst : f32 to vector<8x128xf32>
    %7 = arith.mulf %6, %4 : vector<8x128xf32>
    %8 = arith.addf %7, %3 : vector<8x128xf32>
    %cst_6 = arith.constant 1.000000e+00 : f32
    %9 = vector.broadcast %cst_6 : f32 to vector<8x128xf32>
    %10 = arith.mulf %5, %9 : vector<8x128xf32>
    %11 = arith.subf %8, %10 : vector<8x128xf32>
    %cst_7 = arith.constant 1.000000e+00 : f32
    %12 = vector.broadcast %cst_7 : f32 to vector<8x128xf32>
    %13 = arith.cmpf ogt, %11, %12 : vector<8x128xf32>
    %14 = arith.extui %13 : vector<8x128xi1> to vector<8x128xi32>
    %15 = arith.sitofp %14 : vector<8x128xi32> to vector<8x128xf32>
    %c0_8 = arith.constant 0 : index
    %c0_9 = arith.constant 0 : index
    %c0_10 = arith.constant 0 : index
    %16 = vector.load %arg5[%c0_8, %c0_9, %c0_10] : memref<4x8x128xf32, #tpu.memory_space<vmem>>, vector<1x8x128xf32>
    %17 = vector.shape_cast %16 : vector<1x8x128xf32> to vector<8x128xf32>
    %18 = vector.shape_cast %15 : vector<8x128xf32> to vector<1x8x128xf32>
    tpu.vector_store %arg5[%c0_8, %c0_9, %c0_10], %18 {strides = array<i32>} : memref<4x8x128xf32, #tpu.memory_space<vmem>>, vector<1x8x128xf32>,
    %c0_11 = arith.constant 0 : index
    %c0_12 = arith.constant 0 : index
    %c0_13 = arith.constant 0 : index
    %19 = vector.load %arg6[%c0_11, %c0_12, %c0_13] : memref<4x8x128xf32, #tpu.memory_space<vmem>>, vector<1x8x128xf32>
    %20 = vector.shape_cast %19 : vector<1x8x128xf32> to vector<8x128xf32>
    %21 = vector.shape_cast %11 : vector<8x128xf32> to vector<1x8x128xf32>
    tpu.vector_store %arg6[%c0_11, %c0_12, %c0_13], %21 {strides = array<i32>} : memref<4x8x128xf32, #tpu.memory_space<vmem>>, vector<1x8x128xf32>,
    %cst_14 = arith.constant 0.899999976 : f32
    %22 = vector.broadcast %cst_14 : f32 to vector<8x128xf32>
    %23 = arith.mulf %22, %11 : vector<8x128xf32>
    %24 = arith.addf %23, %3 : vector<8x128xf32>
    %cst_15 = arith.constant 1.000000e+00 : f32
    %25 = vector.broadcast %cst_15 : f32 to vector<8x128xf32>
    %26 = arith.mulf %15, %25 : vector<8x128xf32>
    %27 = arith.subf %24, %26 : vector<8x128xf32>
    %cst_16 = arith.constant 1.000000e+00 : f32
    %28 = vector.broadcast %cst_16 : f32 to vector<8x128xf32>
    %29 = arith.cmpf ogt, %27, %28 : vector<8x128xf32>
    %30 = arith.extui %29 : vector<8x128xi1> to vector<8x128xi32>
    %31 = arith.sitofp %30 : vector<8x128xi32> to vector<8x128xf32>
    %c1 = arith.constant 1 : index
    %c0_17 = arith.constant 0 : index
    %c0_18 = arith.constant 0 : index
    %32 = vector.load %arg5[%c1, %c0_17, %c0_18] : memref<4x8x128xf32, #tpu.memory_space<vmem>>, vector<1x8x128xf32>
    %33 = vector.shape_cast %32 : vector<1x8x128xf32> to vector<8x128xf32>
    %34 = vector.shape_cast %31 : vector<8x128xf32> to vector<1x8x128xf32>
    tpu.vector_store %arg5[%c1, %c0_17, %c0_18], %34 {strides = array<i32>} : memref<4x8x128xf32, #tpu.memory_space<vmem>>, vector<1x8x128xf32>,
    %c1_19 = arith.constant 1 : index
    %c0_20 = arith.constant 0 : index
    %c0_21 = arith.constant 0 : index
    %35 = vector.load %arg6[%c1_19, %c0_20, %c0_21] : memref<4x8x128xf32, #tpu.memory_space<vmem>>, vector<1x8x128xf32>
    %36 = vector.shape_cast %35 : vector<1x8x128xf32> to vector<8x128xf32>
    %37 = vector.shape_cast %27 : vector<8x128xf32> to vector<1x8x128xf32>
    tpu.vector_store %arg6[%c1_19, %c0_20, %c0_21], %37 {strides = array<i32>} : memref<4x8x128xf32, #tpu.memory_space<vmem>>, vector<1x8x128xf32>,
    %cst_22 = arith.constant 0.899999976 : f32
    %38 = vector.broadcast %cst_22 : f32 to vector<8x128xf32>
    %39 = arith.mulf %38, %27 : vector<8x128xf32>
    %40 = arith.addf %39, %3 : vector<8x128xf32>
    %cst_23 = arith.constant 1.000000e+00 : f32
    %41 = vector.broadcast %cst_23 : f32 to vector<8x128xf32>
    %42 = arith.mulf %31, %41 : vector<8x128xf32>
    %43 = arith.subf %40, %42 : vector<8x128xf32>
    %cst_24 = arith.constant 1.000000e+00 : f32
    %44 = vector.broadcast %cst_24 : f32 to vector<8x128xf32>
    %45 = arith.cmpf ogt, %43, %44 : vector<8x128xf32>
    %46 = arith.extui %45 : vector<8x128xi1> to vector<8x128xi32>
    %47 = arith.sitofp %46 : vector<8x128xi32> to vector<8x128xf32>
    %c2 = arith.constant 2 : index
    %c0_25 = arith.constant 0 : index
    %c0_26 = arith.constant 0 : index
    %48 = vector.load %arg5[%c2, %c0_25, %c0_26] : memref<4x8x128xf32, #tpu.memory_space<vmem>>, vector<1x8x128xf32>
    %49 = vector.shape_cast %48 : vector<1x8x128xf32> to vector<8x128xf32>
    %50 = vector.shape_cast %47 : vector<8x128xf32> to vector<1x8x128xf32>
    tpu.vector_store %arg5[%c2, %c0_25, %c0_26], %50 {strides = array<i32>} : memref<4x8x128xf32, #tpu.memory_space<vmem>>, vector<1x8x128xf32>,
    %c2_27 = arith.constant 2 : index
    %c0_28 = arith.constant 0 : index
    %c0_29 = arith.constant 0 : index
    %51 = vector.load %arg6[%c2_27, %c0_28, %c0_29] : memref<4x8x128xf32, #tpu.memory_space<vmem>>, vector<1x8x128xf32>
    %52 = vector.shape_cast %51 : vector<1x8x128xf32> to vector<8x128xf32>
    %53 = vector.shape_cast %43 : vector<8x128xf32> to vector<1x8x128xf32>
    tpu.vector_store %arg6[%c2_27, %c0_28, %c0_29], %53 {strides = array<i32>} : memref<4x8x128xf32, #tpu.memory_space<vmem>>, vector<1x8x128xf32>,
    %cst_30 = arith.constant 0.899999976 : f32
    %54 = vector.broadcast %cst_30 : f32 to vector<8x128xf32>
    %55 = arith.mulf %54, %43 : vector<8x128xf32>
    %56 = arith.addf %55, %3 : vector<8x128xf32>
    %cst_31 = arith.constant 1.000000e+00 : f32
    %57 = vector.broadcast %cst_31 : f32 to vector<8x128xf32>
    %58 = arith.mulf %47, %57 : vector<8x128xf32>
    %59 = arith.subf %56, %58 : vector<8x128xf32>
    %cst_32 = arith.constant 1.000000e+00 : f32
    %60 = vector.broadcast %cst_32 : f32 to vector<8x128xf32>
    %61 = arith.cmpf ogt, %59, %60 : vector<8x128xf32>
    %62 = arith.extui %61 : vector<8x128xi1> to vector<8x128xi32>
    %63 = arith.sitofp %62 : vector<8x128xi32> to vector<8x128xf32>
    %c3 = arith.constant 3 : index
    %c0_33 = arith.constant 0 : index
    %c0_34 = arith.constant 0 : index
    %64 = vector.load %arg5[%c3, %c0_33, %c0_34] : memref<4x8x128xf32, #tpu.memory_space<vmem>>, vector<1x8x128xf32>
    %65 = vector.shape_cast %64 : vector<1x8x128xf32> to vector<8x128xf32>
    %66 = vector.shape_cast %63 : vector<8x128xf32> to vector<1x8x128xf32>
    tpu.vector_store %arg5[%c3, %c0_33, %c0_34], %66 {strides = array<i32>} : memref<4x8x128xf32, #tpu.memory_space<vmem>>, vector<1x8x128xf32>,
    %c3_35 = arith.constant 3 : index
    %c0_36 = arith.constant 0 : index
    %c0_37 = arith.constant 0 : index
    %67 = vector.load %arg6[%c3_35, %c0_36, %c0_37] : memref<4x8x128xf32, #tpu.memory_space<vmem>>, vector<1x8x128xf32>
    %68 = vector.shape_cast %67 : vector<1x8x128xf32> to vector<8x128xf32>
    %69 = vector.shape_cast %59 : vector<8x128xf32> to vector<1x8x128xf32>
    tpu.vector_store %arg6[%c3_35, %c0_36, %c0_37], %69 {strides = array<i32>} : memref<4x8x128xf32, #tpu.memory_space<vmem>>, vector<1x8x128xf32>,
    %c0_38 = arith.constant 0 : index
    %c0_39 = arith.constant 0 : index
    %70 = vector.load %arg7[%c0_38, %c0_39] : memref<8x128xf32, #tpu.memory_space<vmem>>, vector<8x128xf32>
    tpu.vector_store %arg7[%c0_38, %c0_39], %59 {strides = array<i32>} : memref<8x128xf32, #tpu.memory_space<vmem>>, vector<8x128xf32>,
    %c0_40 = arith.constant 0 : index
    %c0_41 = arith.constant 0 : index
    %71 = vector.load %arg8[%c0_40, %c0_41] : memref<8x128xf32, #tpu.memory_space<vmem>>, vector<8x128xf32>
    tpu.vector_store %arg8[%c0_40, %c0_41], %63 {strides = array<i32>} : memref<8x128xf32, #tpu.memory_space<vmem>>, vector<8x128xf32>,
    return
  }
  func.func @transform_0(%arg0: i32, %arg1: i32) -> (i32, i32) {
    %c0_i32 = arith.constant 0 : i32
    %c0_i32_0 = arith.constant 0 : i32
    %c0_i32_1 = arith.constant 0 : i32
    return %c0_i32, %c0_i32_0 : i32, i32
  }
  func.func @transform_1(%arg0: i32, %arg1: i32) -> (i32, i32) {
    %c0_i32 = arith.constant 0 : i32
    %c0_i32_0 = arith.constant 0 : i32
    return %c0_i32, %arg0 : i32, i32
  }
  func.func @transform_2(%arg0: i32, %arg1: i32) -> (i32, i32) {
    %c0_i32 = arith.constant 0 : i32
    %c0_i32_0 = arith.constant 0 : i32
    return %c0_i32, %arg0 : i32, i32
  }
  func.func @transform_3(%arg0: i32, %arg1: i32) -> (i32, i32, i32) {
    %c0_i32 = arith.constant 0 : i32
    %c0_i32_0 = arith.constant 0 : i32
    return %arg1, %c0_i32, %arg0 : i32, i32, i32
  }
  func.func @transform_4(%arg0: i32, %arg1: i32) -> (i32, i32, i32) {
    %c0_i32 = arith.constant 0 : i32
    %c0_i32_0 = arith.constant 0 : i32
    return %arg1, %c0_i32, %arg0 : i32, i32, i32
  }
}

</mosaic_0001>

<bundles_post_ra>
// kernel: tpu_custom_call.1
= control target key start
LH: loop header
LB: loop body
LE: loop exit
PB: predicated region body
PF: predicated region fallthrough
CT: control target
= control target key end

     0   :  { %10 = vsyncpa [#allocation6], 0  ;;  %s1271_s0 = inlined_call_operand.hbm [shape: f32[8,128], index: 0, kind: input, shape index: {}]   ;;  %s1272_s1 = inlined_call_operand.hbm [shape: f32[128,128], index: 1, kind: input, shape index: {}]   ;;  %s1273_s2 = inlined_call_operand.hbm [shape: f32[1,128], index: 2, kind: input, shape index: {}]   ;;  %s1274_s3 = inlined_call_operand.hbm [shape: f32[8,8,128], index: 3, kind: output, shape index: {0}]   ;;  %s1275_s4 = inlined_call_operand.hbm [shape: f32[8,8,128], index: 4, kind: output, shape index: {1}]  }
   0x1   :  { %11 = vsyncpa [#allocation9], 0 }
   0x2   :  { %12 = vsyncpa [#allocation7], 0 }
   0x3   :  { %14 = vsyncpa [#allocation7 + $0x1], 0 }
   0x4   :  { %15 = vsyncpa [#allocation13], 0 }
   0x5   :  { %17 = vsyncpa [#allocation13 + $0x1], 0  ;;  %s1020_s15 = smov 0   ;;  %s1022_s16 = smov 0  }
   0x6   :  { %s1024_s17 = smov 0   ;;  %s1026_s18 = smov 0  }
   0x7   :  { %s1028_s19 = smov 0   ;;  %s1030_s20 = smov 0  }
   0x8 LB: > { %s569_s21 = sadd.s32 4294967295, %s980_s20   ;;  %s570_s22 = sadd.s32 4294967294, %s980_s20   ;;  %s980_s20 = sphi %s1030_s20, %s23_s20   ;;  %s976_s19 = sphi %s1028_s19, %s1297_s19   ;;  %s972_s18 = sphi %s1026_s18, %s1296_s18   ;;  %s968_s17 = sphi %s1024_s17, %s1295_s17   ;;  %s964_s16 = sphi %s1022_s16, %s1294_s16   ;;  %s960_s15 = sphi %s1020_s15, %s1293_s15  }
   0x9   : > { %s32_s23 = sadd.s32 1, %s976_s19  ;;  %s117_s24 = sadd.s32 1, %s968_s17 }
   0xa   : > { %p33_p0 = scmp.ge.s32.totalorder %s32_s23, 2  ;;  %p127_p1 = scmp.ne.s32.totalorder %s968_s17, %s964_s16 }
   0xb   : > { %p128_p2 = scmp.eq.s32.totalorder %s569_s21, 1  ;;  %p133_p3 = scmp.ne.s32.totalorder %s964_s16, %s960_s15 }
   0xc   : > { %s1299_s23 = smov (%p33_p0, %s32_s23), 0  ;;  %p134_p5 = scmp.eq.s32.totalorder %s570_s22, 1 }
   0xd   : > { %1281 = sst [smem:[#allocation18_spill]] %s1299_s23  ;;  %p1060_p4 = por %p128_p2, %p127_p1 }
   0xe   : > { %s112_s26 = ssub.s32 %s976_s19, %s1299_s23  ;;  %p571_p6 = scmp.ge.s32.totalorder %s980_s20, 1 }
   0xf   : > { %s1282_s25 = scalar_select %p1060_p4, 1, 0 }
  0x10   : > { %p115_p7 = scmp.eq.s32.totalorder %s112_s26, 0  ;;  %p1067_p8 = por %p134_p5, %p133_p3 }
  0x11   : > { %p169_p9 = scmp.lt.s32.totalorder %s980_s20, 3  ;;  %p1079_p11 = scmp.eq.s32.totalorder %s569_s21, 0 }
  0x12   : > { %s1283_s27 = scalar_select %p1067_p8, 1, 0 }
  0x13   : > { %s1073_s28 = scalar_select %p115_p7, %s968_s17, %s117_s24  }
  0x14   : > { %p1075_p10 = pnand %p571_p6, %p169_p9  ;;  %s982_s5 = smov [#allocation8]  }
  0x15   : > { %s1285_s30 = scalar_select %p1079_p11, 1, 0 }
  0x16   : > { %s1284_s29 = scalar_select %p1075_p10, 1, 0 }
  0x17   : > { %p695_p12 = pneg %p1075_p10  ;;  %s194_s6 = sshll.u32 %s982_s5, 4  ;;  %s195_s6 = int_to_ptr.vmem [resolvable:$true] %s194_s6 }
  0x18   : > { %s983_s8 = smov [#allocation5]   ;;  %s778_s12 = scalar_lea.hbm %s1272_s1, 2048 }
  0x19   : > { %p1087_p13 = pnand %p1079_p11, %p695_p12  ;;  %s182_s9 = sshll.u32 %s983_s8, 4  ;;  %s183_s9 = int_to_ptr.vmem [resolvable:$true] %s182_s9 }
  0x1a   : > { %p779_p0 = scmp.ne.s32.totalorder %s1272_s1, %s778_s12  ;;  %p785_p5 = scmp.lt.u32.totalorder %s778_s12, %s1272_s1 }
  0x1b   : > { %p1099_p1 = pneg %p1087_p13 }
  0x1d   : > { %p781_p2 = pnand %p1099_p1, %p779_p0 }
  0x1f   : > { %p782_p3 = pneg %p781_p2 }
  0x21   : > { %p787_p6 = pnand %p785_p5, %p782_p3 }
  0x23   : > { %790 = shalt.err (!%p787_p6)
}
  0x24   : > { %s791_s26 = scalar_lea.vmem %s195_s6, 2048  ;;  %p799_p8 = scmp.lt.s32.totalorder %s195_s6, %s195_s6 }
  0x25   : > { %p792_p7 = scmp.ne.s32.totalorder %s195_s6, %s791_s26  ;;  %p800_p4 = scmp.lt.s32.totalorder %s791_s26, %s791_s26 }
  0x27   : > { %p794_p9 = pnand %p792_p7, %p1099_p1  ;;  %p801_p11 = por %p800_p4, %p799_p8 }
  0x29   : > { %p795_p12 = pneg %p794_p9 }
  0x2b   : > { %p802_p10 = pnand %p801_p11, %p795_p12 }
  0x2d   : > { %805 = shalt.err (!%p802_p10)
}
  0x2e   : > { %s984_s5 = smov 128   ;;  %s985_s8 = smov 8  }
  0x2f   : > { %701 = dma.hbm_to_vmem [thread:$0]  (!%p1087_p13), %s1272_s1, 2048, %s195_s6, [#allocation9], %s984_s5, %s984_s5, %s985_s8  }
  0x30   : > { %s806_s14 = scalar_lea.hbm %s1271_s0, 128 }
  0x31   : > { %p807_p4 = scmp.ne.s32.totalorder %s1271_s0, %s806_s14  ;;  %p813_p11 = scmp.lt.u32.totalorder %s806_s14, %s1271_s0 }
  0x33   : > { %p809_p8 = pnand %p807_p4, %p1099_p1 }
  0x35   : > { %p810_p10 = pneg %p809_p8 }
  0x37   : > { %p815_p0 = pnand %p813_p11, %p810_p10 }
  0x39   : > { %818 = shalt.err (!%p815_p0)
}
  0x3a   : > { %s819_s10 = scalar_lea.vmem %s183_s9, 128  ;;  %p827_p6 = scmp.lt.s32.totalorder %s183_s9, %s183_s9 }
  0x3b   : > { %p820_p2 = scmp.ne.s32.totalorder %s183_s9, %s819_s10  ;;  %p828_p7 = scmp.lt.s32.totalorder %s819_s10, %s819_s10 }
  0x3d   : > { %p822_p3 = pnand %p820_p2, %p1099_p1  ;;  %p829_p9 = por %p828_p7, %p827_p6 }
  0x3f   : > { %p823_p5 = pneg %p822_p3 }
  0x41   : > { %p830_p12 = pnand %p829_p9, %p823_p5 }
  0x43   : > { %833 = shalt.err (!%p830_p12)
}
  0x44   : > { %698 = dma.hbm_to_vmem [thread:$0]  (!%p1087_p13), %s1271_s0, 128, %s183_s9, [#allocation6]  }
  0x45   : > { %s986_s23 = smov [#allocation10]   ;;  %s834_s13 = scalar_lea.hbm %s1273_s2, 16 }
  0x46   : > { %s210_s8 = sshll.u32 %s986_s23, 4  ;;  %p835_p4 = scmp.ne.s32.totalorder %s1273_s2, %s834_s13  ;;  %s211_s8 = int_to_ptr.vmem [resolvable:$true] %s210_s8 }
  0x47   : > { %p841_p11 = scmp.lt.u32.totalorder %s834_s13, %s1273_s2 }
  0x48   : > { %p837_p8 = pnand %p835_p4, %p1099_p1 }
  0x4a   : > { %p838_p10 = pneg %p837_p8 }
  0x4c   : > { %p843_p0 = pnand %p841_p11, %p838_p10 }
  0x4e   : > { %846 = shalt.err (!%p843_p0)
}
  0x4f   : > { %s847_s9 = scalar_lea.vmem %s211_s8, 16  ;;  %s854_s10 = scalar_lea.vmem %s211_s8, 32 }
  0x50   : > { %p848_p2 = scmp.ne.s32.totalorder %s211_s8, %s847_s9  ;;  %p855_p6 = scmp.lt.s32.totalorder %s211_s8, %s211_s8 }
  0x51   : > { %p856_p7 = scmp.lt.s32.totalorder %s854_s10, %s847_s9 }
  0x52   : > { %p850_p3 = pnand %p848_p2, %p1099_p1 }
  0x53   : > { %p857_p9 = por %p856_p7, %p855_p6 }
  0x54   : > { %p851_p5 = pneg %p850_p3 }
  0x56   : > { %p858_p12 = pnand %p857_p9, %p851_p5 }
  0x58   : > { %861 = shalt.err (!%p858_p12)
}
  0x59   : > { %704 = dma.hbm_to_vmem [thread:$0]  (!%p1087_p13), %s1273_s2, 16, %s211_s8, [#allocation9]  }
  0x5a   : > { %p1288_p4 = scmp.ne.s32.totalorder %s1284_s29, 0 }
  0x5b   : > { %p1289_p8 = scmp.ne.s32.totalorder (!%p1288_p4), %s1285_s30, 0 }
  0x5c   : > { %223 = sbr.rel (%p1288_p4) target bundleno = 420 (0x1a4), region = 32 }
  0x63   : > { %943 = dma.done.wait (%p1289_p8), [#allocation6], 128  }
  0x64   : > { %945 = vsyncadd (%p1289_p8), [#allocation6], 4294967168 }
  0x65   : > { %947 = dma.done.wait (%p1289_p8), [#allocation9], 2064  }
  0x66   : > { %949 = vsyncadd (%p1289_p8), [#allocation9], 4294965232  ;;  %s1162_s7 = sand.u32 1, %s964_s16   ;;  %p581_p13 = scmp.ne.s32.totalorder %s972_s18, 0 }
  0x67   : > { %s579_s21 = sshll.u32 %s1162_s7, 5  ;;  %v266_v0 = vld [vmem:[#allocation8] sm:$0xff] (!%p581_p13)  ;;  %v267_v1 = vld [vmem:[#allocation8 + $0x8] sm:$0xff] (!%p581_p13)  ;;  %v268_v2 = vld [vmem:[#allocation8 + $0x10] sm:$0xff] (!%p581_p13)  ;;  %v987_v3 = vmov (!%p581_p13), 0.0|0.0   ;;  %v988_v6 = vmov (!%p581_p13), 0.0  }
  0x68   : > { %s1165_s23 = scalar_lea.vmem [#allocation11], %s579_s21  ;;  %s1167_s29 = scalar_lea.vmem [#allocation12], %s579_s21  ;;  %655 = vmatprep.subr.bf16.mxu0 (!%p581_p13), %v987_v3  ;;  %v656_v4 = vpack.c.bf16 (!%p581_p13), %v267_v1, %v266_v0  ;;  %v269_v5 = vld [vmem:[#allocation8 + $0x18] sm:$0xff] (!%p581_p13)  ;;  %263 = vst [vmem:[#allocation2] sm:$0xff] (!%p581_p13), %v988_v6  ;;  %264 = vst [vmem:[#allocation3] sm:$0xff] (!%p581_p13), %v988_v6  ;;  %vm989_vm0 = vmmov (!%p581_p13), 0  }
  0x69   : > { %262 = sbr.rel (%p581_p13) target bundleno = 352 (0x160), region = 48  ;;  %652 = vmatprep.mubr.msk.f32.mxu0 (!%p581_p13), %vm989_vm0, %v988_v6  ;;  %v659_v7 = vpack.c.bf16 (!%p581_p13), %v269_v5, %v268_v2  ;;  %v270_v8 = vld [vmem:[#allocation8 + $0x20] sm:$0xff] (!%p581_p13)  ;;  %v271_v9 = vld [vmem:[#allocation8 + $0x28] sm:$0xff] (!%p581_p13)  ;;  %v272_v11 = vld [vmem:[#allocation8 + $0x30] sm:$0xff] (!%p581_p13) }
  0x6a   : > { %657 = vmatpush3.bf16.msra.mxu0 (!%p581_p13), %v656_v4  ;;  %v662_v10 = vpack.c.bf16 (!%p581_p13), %v271_v9, %v270_v8  ;;  %v273_v12 = vld [vmem:[#allocation8 + $0x38] sm:$0xff] (!%p581_p13)  ;;  %v274_v14 = vld [vmem:[#allocation8 + $0x40] sm:$0xff] (!%p581_p13)  ;;  %v275_v15 = vld [vmem:[#allocation8 + $0x48] sm:$0xff] (!%p581_p13) }
  0x6b   : > { %658 = vmatprep.subr.bf16.mxu0 (!%p581_p13), %v987_v3  ;;  %v665_v13 = vpack.c.bf16 (!%p581_p13), %v273_v12, %v272_v11  ;;  %v668_v16 = vpack.c.bf16 (!%p581_p13), %v275_v15, %v274_v14  ;;  %v276_v17 = vld [vmem:[#allocation8 + $0x50] sm:$0xff] (!%p581_p13)  ;;  %v277_v18 = vld [vmem:[#allocation8 + $0x58] sm:$0xff] (!%p581_p13)  ;;  %v278_v20 = vld [vmem:[#allocation8 + $0x60] sm:$0xff] (!%p581_p13) }
  0x6c   : > { %v671_v19 = vpack.c.bf16 (!%p581_p13), %v277_v18, %v276_v17  ;;  %v279_v21 = vld [vmem:[#allocation8 + $0x68] sm:$0xff] (!%p581_p13)  ;;  %v280_v23 = vld [vmem:[#allocation8 + $0x70] sm:$0xff] (!%p581_p13)  ;;  %v281_v24 = vld [vmem:[#allocation8 + $0x78] sm:$0xff] (!%p581_p13) }
  0x6d   : > { %v674_v22 = vpack.c.bf16 (!%p581_p13), %v279_v21, %v278_v20  ;;  %v677_v25 = vpack.c.bf16 (!%p581_p13), %v281_v24, %v280_v23  ;;  %v265_v26 = vld [vmem:[#allocation5] sm:$0xff] (!%p581_p13)  ;;  %v582_v27 = vld [vmem:[#allocation10] ss:$0 sm:$0xff] (!%p581_p13) }
  0x6e   : > { %660 = vmatpush3.bf16.msra.mxu0 (!%p581_p13), %v659_v7 }
  0x6f   : > { %661 = vmatprep.subr.bf16.mxu0 (!%p581_p13), %v987_v3 }
  0x72   : > { %663 = vmatpush3.bf16.msra.mxu0 %v662_v10 }
  0x73   : > { %664 = vmatprep.subr.bf16.mxu0 %v987_v3 }
  0x76   : > { %666 = vmatpush3.bf16.msra.mxu0 %v665_v13 }
  0x77   : > { %667 = vmatprep.subr.bf16.mxu0 %v987_v3 }
  0x7a   : > { %669 = vmatpush3.bf16.msra.mxu0 %v668_v16 }
  0x7b   : > { %670 = vmatprep.subr.bf16.mxu0 %v987_v3 }
  0x7e   : > { %672 = vmatpush3.bf16.msra.mxu0 %v671_v19 }
  0x7f   : > { %673 = vmatprep.subr.bf16.mxu0 %v987_v3 }
  0x82   : > { %675 = vmatpush3.bf16.msra.mxu0 %v674_v22 }
  0x83   : > { %676 = vmatprep.subr.bf16.mxu0 %v987_v3 }
  0x86   : > { %678 = vmatpush3.bf16.msra.mxu0 %v677_v25 }
  0x89   : > { %653 = vmatmul.mubr.f32.vlgmr.msra.gmra.mrb[0].mxu0 %v265_v26 }
 0x15c   : > { %v355_v28 = vpop.f32.mrb[0].mxu0 }
 0x15d   : > { %v356_v29 = vadd.f32 %v582_v27, %v355_v28  ;;  %v654_v30 = vpop.f32.mrb[1].mxu0 }
 0x15f   : > { %359 = vst [vmem:[#allocation4] sm:$0xff] %v356_v29 }
 0x160 PF: > { %v361_v32 = vld [vmem:[#allocation2] sm:$0xff]  ;;  %v362_v34 = vld [vmem:[#allocation3] sm:$0xff]  ;;  %v990_v38 = vmov 0.0   ;;  %s601_s30 = sshll.u32 %s972_s18, 9  ;;  %s440_s8 = sshll.u32 %s1167_s29, 4  ;;  %s1184_s8 = int_to_ptr.vmem [resolvable:$true] %s440_s8 }
 0x161   : > { %v363_v33 = vmul.f32 0.9, %v361_v32  ;;  %s423_s11 = sshll.u32 %s1165_s23, 4  ;;  %s1182_s14 = scalar_lea.hbm %s1275_s4, %s601_s30  ;;  %s1192_s11 = int_to_ptr.vmem [resolvable:$true] %s423_s11 }
 0x162   : > { %s1190_s24 = scalar_lea.hbm %s1274_s3, %s601_s30  ;;  %s409_s26 = scalar_lea.sflag [#allocation13], %s1162_s7 }
 0x163   : > { %s862_s9 = scalar_lea.vmem %s1184_s8, 512  ;;  %p1290_p10 = scmp.ne.s32.totalorder %s1282_s25, 0 }
 0x164   : > { %p863_p1 = scmp.ne.s32.totalorder %s1184_s8, %s862_s9  ;;  %s991_s10 = smov [#allocation12]  }
 0x165   : > { %s866_s6 = sshll.u32 %s991_s10, 4  ;;  %s867_s6 = int_to_ptr.vmem [resolvable:$false] %s866_s6 }
 0x166   : > { %v360_v31 = vld [vmem:[#allocation4] sm:$0xff]  ;;  %p864_p11 = pnand %p863_p1, %p1290_p10  ;;  %s868_s5 = scalar_lea.vmem %s867_s6, 1024 }
 0x167   : > { %v364_v35 = vadd.f32 %v363_v33, %v360_v31  ;;  %p869_p2 = scmp.lt.s32.totalorder %s1184_s8, %s867_s6  ;;  %p870_p3 = scmp.lt.s32.totalorder %s868_s5, %s862_s9 }
 0x168   : > { %p865_p0 = pneg %p864_p11 }
 0x169   : > { %v365_v36 = vsub.f32 %v364_v35, %v362_v34  ;;  %p871_p5 = por %p870_p3, %p869_p2 }
 0x16b   : > { %vm366_vm1 = vcmp.gt.f32.partialorder %v365_v36, 1.0  ;;  %v371_v37 = vmul.f32 0.9, %v365_v36  ;;  %370 = vst [vmem:[%s1167_s29] sm:$0xff] %v365_v36  ;;  %p872_p6 = pnand %p871_p5, %p865_p0 }
 0x16c   : > { %v583_v39 = vsel %vm366_vm1, 1.0, %v990_v38 }
 0x16d   : > { %369 = vst [vmem:[%s1165_s23] sm:$0xff] %v583_v39  ;;  %v372_v40 = vadd.f32 %v371_v37, %v360_v31 }
 0x16f   : > { %v373_v41 = vsub.f32 %v372_v40, %v583_v39 }
 0x171   : > { %586 = vst [vmem:[%s1167_s29 + $0x8] sm:$0xff] %v373_v41  ;;  %vm374_vm2 = vcmp.gt.f32.partialorder %v373_v41, 1.0  ;;  %v381_v42 = vmul.f32 0.9, %v373_v41 }
 0x172   : > { %v584_v43 = vsel %vm374_vm2, 1.0, %v990_v38 }
 0x173   : > { %585 = vst [vmem:[%s1165_s23 + $0x8] sm:$0xff] %v584_v43  ;;  %v382_v44 = vadd.f32 %v381_v42, %v360_v31 }
 0x175   : > { %v383_v45 = vsub.f32 %v382_v44, %v584_v43 }
 0x177   : > { %589 = vst [vmem:[%s1167_s29 + $0x10] sm:$0xff] %v383_v45  ;;  %vm384_vm3 = vcmp.gt.f32.partialorder %v383_v45, 1.0  ;;  %v391_v46 = vmul.f32 0.9, %v383_v45 }
 0x178   : > { %v587_v47 = vsel %vm384_vm3, 1.0, %v990_v38 }
 0x179   : > { %588 = vst [vmem:[%s1165_s23 + $0x10] sm:$0xff] %v587_v47  ;;  %v392_v48 = vadd.f32 %v391_v46, %v360_v31 }
 0x17b   : > { %v393_v49 = vsub.f32 %v392_v48, %v587_v47 }
 0x17d   : > { %592 = vst [vmem:[%s1167_s29 + $0x18] sm:$0xff] %v393_v49  ;;  %401 = vst [vmem:[#allocation2] sm:$0xff] %v393_v49  ;;  %vm394_vm4 = vcmp.gt.f32.partialorder %v393_v49, 1.0 }
 0x17e   : > { %v590_v50 = vsel %vm394_vm4, 1.0, %v990_v38 }
 0x17f   : > { %875 = shalt.err (!%p872_p6)
}
 0x180   : > { %s876_s21 = scalar_lea.hbm %s1182_s14, 512  ;;  %s880_s12 = scalar_lea.hbm %s1275_s4, 1024 }
 0x181   : > { %p877_p7 = scmp.ne.s32.totalorder %s1182_s14, %s876_s21  ;;  %p881_p4 = scmp.lt.u32.totalorder %s1182_s14, %s1275_s4 }
 0x182   : > { %p882_p8 = scmp.lt.u32.totalorder %s880_s12, %s876_s21  ;;  %p884_p1 = scmp.lt.u32.totalorder %s876_s21, %s1182_s14 }
 0x183   : > { %p878_p9 = pnand %p877_p7, %p1290_p10 }
 0x184   : > { %p883_p13 = por %p882_p8, %p881_p4 }
 0x185   : > { %p879_p12 = pneg %p878_p9 }
 0x186   : > { %p885_p11 = por %p884_p1, %p883_p13 }
 0x188   : > { %p886_p0 = pnand %p885_p11, %p879_p12 }
 0x18a   : > { %889 = shalt.err (!%p886_p0)
}
 0x18b   : > { %s992_s22 = smov 128   ;;  %s993_s9 = smov 8   ;;  %591 = vst [vmem:[%s1165_s23 + $0x18] sm:$0xff] %v590_v50  ;;  %402 = vst [vmem:[#allocation3] sm:$0xff] %v590_v50 }
 0x18c   : > { %692 = dma.vmem_to_hbm [thread:$0]  (%p1290_p10), %s1184_s8, 512, %s1182_s14, %s409_s26, %s992_s22, %s992_s22, %s993_s9  }
 0x18d   : > { %s404_s10 = scalar_lea.sflag [#allocation7], %s1162_s7  ;;  %s890_s6 = scalar_lea.vmem %s1192_s11, 512 }
 0x18e   : > { %p891_p2 = scmp.ne.s32.totalorder %s1192_s11, %s890_s6  ;;  %s994_s5 = smov [#allocation11]  }
 0x18f   : > { %s894_s21 = sshll.u32 %s994_s5, 4  ;;  %s895_s21 = int_to_ptr.vmem [resolvable:$false] %s894_s21 }
 0x190   : > { %p892_p3 = pnand %p891_p2, %p1290_p10  ;;  %s896_s29 = scalar_lea.vmem %s895_s21, 1024 }
 0x191   : > { %p897_p6 = scmp.lt.s32.totalorder %s1192_s11, %s895_s21  ;;  %p898_p7 = scmp.lt.s32.totalorder %s896_s29, %s890_s6 }
 0x192   : > { %p893_p5 = pneg %p892_p3 }
 0x193   : > { %p899_p9 = por %p898_p7, %p897_p6 }
 0x195   : > { %p900_p12 = pnand %p899_p9, %p893_p5 }
 0x197   : > { %903 = shalt.err (!%p900_p12)
}
 0x198   : > { %s904_s23 = scalar_lea.hbm %s1190_s24, 512  ;;  %s908_s26 = scalar_lea.hbm %s1274_s3, 1024 }
 0x199   : > { %p905_p4 = scmp.ne.s32.totalorder %s1190_s24, %s904_s23  ;;  %p909_p1 = scmp.lt.u32.totalorder %s1190_s24, %s1274_s3 }
 0x19a   : > { %p910_p11 = scmp.lt.u32.totalorder %s908_s26, %s904_s23  ;;  %p912_p2 = scmp.lt.u32.totalorder %s904_s23, %s1190_s24 }
 0x19b   : > { %p906_p8 = pnand %p905_p4, %p1290_p10 }
 0x19c   : > { %p911_p0 = por %p910_p11, %p909_p1 }
 0x19d   : > { %p907_p13 = pneg %p906_p8 }
 0x19e   : > { %p913_p3 = por %p912_p2, %p911_p0 }
 0x1a0   : > { %p914_p5 = pnand %p913_p3, %p907_p13 }
 0x1a2   : > { %917 = shalt.err (!%p914_p5)
}
 0x1a3   : > { %691 = dma.vmem_to_hbm [thread:$0]  (%p1290_p10), %s1192_s11, 512, %s1190_s24, %s404_s10, %s992_s22, %s992_s22, %s993_s9  }
 0x1a4 PF: > { %p718_p6 = scmp.ge.s32.totalorder %s980_s20, 2  ;;  %s455_s13 = sand.u32 1, %s960_s15  }
 0x1a5   : > { %p1291_p7 = scmp.ne.s32.totalorder %s1283_s27, 0  ;;  %s456_s18 = scalar_lea.sflag [#allocation7], %s455_s13 }
 0x1a7   : > { %p706_p9 = pnand %p718_p6, %p1291_p7 }
 0x1a9   : > { %951 = dma.done.wait (!%p706_p9), %s456_s18, 512  }
 0x1aa   : > { %953 = vsyncadd (!%p706_p9), %s456_s18, 4294966784  ;;  %s465_s25 = scalar_lea.sflag [#allocation13], %s455_s13 }
 0x1ab   : > { %955 = dma.done.wait (!%p706_p9), %s465_s25, 512  }
 0x1ac   : > { %957 = vsyncadd (!%p706_p9), %s465_s25, 4294966784  ;;  %s23_s20 = sadd.s32 1, %s980_s20   ;;  %s1292_s7 = sld [smem:[#allocation18_spill]] }
 0x1ad   : > { %p20_p12 = scmp.ge.s32.totalorder %s23_s20, 4   ;;  %s1293_s15 = smov %s964_s16 }
 0x1ae   : > { %s1294_s16 = smov %s968_s17  ;;  %s1295_s17 = smov %s1073_s28 }
 0x1af   : > { %s1296_s18 = smov %s976_s19  ;;  %22 = sbr.rel (!%p20_p12) target bundleno = 8 (0x8), region = 106 }
 0x1b2   : > { %s1297_s19 = smov %s1292_s7 }
 0x1b6   :  { %470 = vsyncpa [#allocation6], 1 }
 0x1b7   :  { %472 = vsyncpa [#allocation6 + $0x1], 1 }
 0x1b8   :  { %473 = vsyncpa [#allocation9], 1 }
 0x1b9   :  { %474 = vsyncpa [#allocation7], 1 }
 0x1ba   :  { %476 = vsyncpa [#allocation7 + $0x1], 1 }
 0x1bb   :  { %477 = vsyncpa [#allocation13], 1 }
 0x1bc   :  { %479 = vsyncpa [#allocation13 + $0x1], 1 }

</bundles_post_ra>
